<compile_context>
chip_gen: v5e
topology: v5e:2x2
jax: 0.10.0
libtpu: 0.0.40
codegen_flags: <defaults>
</compile_context>

<pallas_src>
import functools
import math

import jax
import jax.numpy as jnp
from jax.experimental import pallas as pl
from jax.experimental.pallas import tpu as pltpu


def _pos_enc_kernel(d_ref, a_ref, ph_ref, o_ref, *, G, twoK):
    # d_ref : (TBG, G)      f32  packed depths (G batch rows per packed row)
    # a_ref : (1, G*2K)     f32  [A, A] tiled G times           (resident)
    # ph_ref: (1, G*2K)     f32  [0]*K + [-pi/2]*K tiled G times (resident)
    # o_ref : (TBG, G*2K)   f32  lane-dense output tile
    d = d_ref[...]                                   # (TBG, G)
    tbg = d.shape[0]
    # Lane-expand d: each of the G packed depths broadcast across its 2K lanes.
    pieces = [jnp.broadcast_to(d[:, g:g + 1], (tbg, twoK)) for g in range(G)]
    d_exp = pieces[0] if G == 1 else jnp.concatenate(pieces, axis=-1)  # (TBG, W)
    # One broadcast-FMA + one EUP cos stream + one full-width unmasked store.
    pos = d_exp * a_ref[...] + ph_ref[...]
    o_ref[...] = jnp.cos(pos).astype(o_ref.dtype)


def positional_encoding(d: jax.Array, A: jax.Array, *,
                        block_bytes: int = 4 * 1024 * 1024) -> jax.Array:
    """d: (batch, 1) or (batch,), A: (K,) -> (batch, 2K) float32."""
    batch = d.shape[0]
    K = A.shape[0]
    twoK = 2 * K

    # Lane-packing factor: G batch rows per output row (full 128-lane width
    # when 2K <= 128; G == 1 when 2K >= 128 and the output is already dense).
    G = max(1, 128 // twoK)
    W = G * twoK

    d_flat = d.astype(jnp.float32).reshape(batch)
    A_f = A.astype(jnp.float32)

    # Fused cos/sin: cos(a*d) and cos(a*d - pi/2) == sin(a*d).
    a_cat = jnp.concatenate([A_f, A_f])                                  # (2K,)
    ph_cat = jnp.concatenate([jnp.zeros((K,), jnp.float32),
                              jnp.full((K,), -0.5 * math.pi, jnp.float32)])
    a_full = jnp.tile(a_cat, G).reshape(1, W)
    ph_full = jnp.tile(ph_cat, G).reshape(1, W)

    # Pad batch only to a multiple of 8*G (sublane alignment of the packed
    # layout) — at most 8*G - 1 wasted rows, independent of the tile size.
    align = 8 * G
    padded = ((batch + align - 1) // align) * align
    if padded != batch:
        d_flat = jnp.pad(d_flat, (0, padded - batch))
    R = padded // G                                   # packed rows (multiple of 8)
    d_packed = d_flat.reshape(R, G)

    # Batch tile sized so each grid step writes ~block_bytes of output; the
    # double-buffered footprint (2 * block_bytes + small d tiles) stays well
    # under every generation's scoped-VMEM default.
    rows = max(8, (block_bytes // (W * 4)) // 8 * 8)
    tbg = min(rows, R)
    grid = (pl.cdiv(R, tbg),)                         # ragged last tile is masked

    cost = pl.CostEstimate(
        flops=2 * R * W,                              # one FMA per output element
        transcendentals=R * W,                        # one cos per output element
        bytes_accessed=R * G * 4 + 2 * W * 4 + R * W * 4,
    )

    out_packed = pl.pallas_call(
        functools.partial(_pos_enc_kernel, G=G, twoK=twoK),
        out_shape=jax.ShapeDtypeStruct((R, W), jnp.float32),
        grid_spec=pl.GridSpec(
            grid=grid,
            in_specs=[
                pl.BlockSpec((tbg, G), lambda i: (i, 0)),   # packed d, pipelined
                pl.BlockSpec((1, W), lambda i: (0, 0)),     # A (tiled), resident
                pl.BlockSpec((1, W), lambda i: (0, 0)),     # phase, resident
            ],
            out_specs=pl.BlockSpec((tbg, W), lambda i: (i, 0)),
        ),
        compiler_params=pltpu.CompilerParams(
            dimension_semantics=("parallel",),
        ),
        cost_estimate=cost,
    )(d_packed, a_full, ph_full)

    # Contiguity-preserving unpack: (R, G*2K) -> (R*G, 2K), then drop the small
    # alignment padding (skipped entirely when batch is already aligned).
    out = out_packed.reshape(R * G, twoK)
    if padded != batch:
        out = out[:batch]
    return out


def _reference(d, A):
    pos = A[None, :] * d.reshape(-1, 1)
    return jnp.concatenate([jnp.cos(pos), jnp.sin(pos)], axis=-1)


if __name__ == "__main__":
    key = jax.random.PRNGKey(0)
    k_a, k_d1, k_d2, k_d3 = jax.random.split(key, 4)

    K = 16
    # Learnable parameter init matching torch.nn.init.uniform_(A, 0, 1)
    A = jax.random.uniform(k_a, (K,), dtype=jnp.float32, minval=0.0, maxval=1.0)

    # Case 1: small aligned batch
    batch1 = 8
    d1 = jax.random.uniform(k_d1, (batch1, 1), dtype=jnp.float32, minval=0.0, maxval=4.0)
    enc1 = jax.block_until_ready(positional_encoding(d1, A))
    ref1 = _reference(d1, A)
    assert enc1.shape == (batch1, 2 * K)
    assert jnp.allclose(enc1, ref1, atol=1e-5, rtol=1e-5)

    # Case 2: batch not a multiple of the packed alignment (exercises padding)
    batch2 = 37
    d2 = jax.random.uniform(k_d2, (batch2, 1), dtype=jnp.float32, minval=0.0, maxval=4.0)
    enc2 = jax.block_until_ready(positional_encoding(d2, A))
    ref2 = _reference(d2, A)
    assert enc2.shape == (batch2, 2 * K)
    assert jnp.allclose(enc2, ref2, atol=1e-5, rtol=1e-5)

    # Case 3: multi-tile grid with a ragged last tile (small block_bytes forces it)
    batch3 = 500
    d3 = jax.random.uniform(k_d3, (batch3, 1), dtype=jnp.float32, minval=0.0, maxval=4.0)
    enc3 = jax.block_until_ready(positional_encoding(d3, A, block_bytes=48 * 512))
    ref3 = _reference(d3, A)
    assert enc3.shape == (batch3, 2 * K)
    assert jnp.allclose(enc3, ref3, atol=1e-5, rtol=1e-5)

    print("KERNEL_OK")
</pallas_src>

<mosaic_0001>
module attributes {stable_mosaic.version = 11 : i64} {
  func.func @_pos_enc_kernel(%arg0: i32, %arg1: memref<8x4xf32, #tpu.memory_space<vmem>>, %arg2: memref<1x128xf32, #tpu.memory_space<vmem>>, %arg3: memref<1x128xf32, #tpu.memory_space<vmem>>, %arg4: memref<8x128xf32, #tpu.memory_space<vmem>>) attributes {dimension_semantics = [#tpu.dimension_semantics<parallel>], iteration_bounds = array<i64: 1>, scalar_prefetch = 0 : i64, scratch_operands = 0 : i64, tpu.core_type = #tpu.core_type<tc>, window_params = [{transform_indices = @transform_0, window_bounds = array<i64: 8, 4>}, {pipeline_mode = #tpu.pipeline_mode<synchronous>, transform_indices = @transform_1, window_bounds = array<i64: 1, 128>}, {pipeline_mode = #tpu.pipeline_mode<synchronous>, transform_indices = @transform_2, window_bounds = array<i64: 1, 128>}, {transform_indices = @transform_3, window_bounds = array<i64: 8, 128>}]} {
    %c0 = arith.constant 0 : index
    %c0_0 = arith.constant 0 : index
    %0 = vector.load %arg1[%c0, %c0_0] : memref<8x4xf32, #tpu.memory_space<vmem>>, vector<8x4xf32>
    %1 = vector.extract_strided_slice %0 {offsets = [0, 0], sizes = [8, 1], strides = [1, 1]} : vector<8x4xf32> to vector<8x1xf32>
    %2 = vector.shape_cast %1 : vector<8x1xf32> to vector<8x1xf32>
    %3 = vector.broadcast %2 : vector<8x1xf32> to vector<8x32xf32>
    %4 = vector.extract_strided_slice %0 {offsets = [0, 1], sizes = [8, 1], strides = [1, 1]} : vector<8x4xf32> to vector<8x1xf32>
    %5 = vector.shape_cast %4 : vector<8x1xf32> to vector<8x1xf32>
    %6 = vector.broadcast %5 : vector<8x1xf32> to vector<8x32xf32>
    %7 = vector.extract_strided_slice %0 {offsets = [0, 2], sizes = [8, 1], strides = [1, 1]} : vector<8x4xf32> to vector<8x1xf32>
    %8 = vector.shape_cast %7 : vector<8x1xf32> to vector<8x1xf32>
    %9 = vector.broadcast %8 : vector<8x1xf32> to vector<8x32xf32>
    %10 = vector.extract_strided_slice %0 {offsets = [0, 3], sizes = [8, 1], strides = [1, 1]} : vector<8x4xf32> to vector<8x1xf32>
    %11 = vector.shape_cast %10 : vector<8x1xf32> to vector<8x1xf32>
    %12 = vector.broadcast %11 : vector<8x1xf32> to vector<8x32xf32>
    %13 = tpu.concatenate %3, %6, %9, %12 in 1 : vector<8x32xf32>, vector<8x32xf32>, vector<8x32xf32>, vector<8x32xf32> -> vector<8x128xf32>
    %c0_1 = arith.constant 0 : index
    %c0_2 = arith.constant 0 : index
    %14 = vector.load %arg2[%c0_1, %c0_2] : memref<1x128xf32, #tpu.memory_space<vmem>>, vector<1x128xf32>
    %15 = vector.broadcast %14 : vector<1x128xf32> to vector<8x128xf32>
    %16 = arith.mulf %13, %15 : vector<8x128xf32>
    %c0_3 = arith.constant 0 : index
    %c0_4 = arith.constant 0 : index
    %17 = vector.load %arg3[%c0_3, %c0_4] : memref<1x128xf32, #tpu.memory_space<vmem>>, vector<1x128xf32>
    %18 = vector.broadcast %17 : vector<1x128xf32> to vector<8x128xf32>
    %19 = arith.addf %16, %18 : vector<8x128xf32>
    %20 = math.cos %19 : vector<8x128xf32>
    %c0_5 = arith.constant 0 : index
    %c0_6 = arith.constant 0 : index
    %21 = vector.load %arg4[%c0_5, %c0_6] : memref<8x128xf32, #tpu.memory_space<vmem>>, vector<8x128xf32>
    tpu.vector_store %arg4[%c0_5, %c0_6], %20 {strides = array<i32>} : memref<8x128xf32, #tpu.memory_space<vmem>>, vector<8x128xf32>,
    return
  }
  func.func @transform_0(%arg0: i32) -> (i32, i32) {
    %c0_i32 = arith.constant 0 : i32
    %c0_i32_0 = arith.constant 0 : i32
    return %arg0, %c0_i32 : i32, i32
  }
  func.func @transform_1(%arg0: i32) -> (i32, i32) {
    %c0_i32 = arith.constant 0 : i32
    %c0_i32_0 = arith.constant 0 : i32
    %c0_i32_1 = arith.constant 0 : i32
    return %c0_i32, %c0_i32_0 : i32, i32
  }
  func.func @transform_2(%arg0: i32) -> (i32, i32) {
    %c0_i32 = arith.constant 0 : i32
    %c0_i32_0 = arith.constant 0 : i32
    %c0_i32_1 = arith.constant 0 : i32
    return %c0_i32, %c0_i32_0 : i32, i32
  }
  func.func @transform_3(%arg0: i32) -> (i32, i32) {
    %c0_i32 = arith.constant 0 : i32
    %c0_i32_0 = arith.constant 0 : i32
    return %arg0, %c0_i32 : i32, i32
  }
}

</mosaic_0001>

<bundles_post_ra>
// kernel: tpu_custom_call.1
= control target key start
LH: loop header
LB: loop body
LE: loop exit
PB: predicated region body
PF: predicated region fallthrough
CT: control target
= control target key end

     0   :  { %v267_v1 = vmov 0   ;;  %v268_v2 = vmov 2   ;;  %s379_s0 = inlined_call_operand.vmem [shape: f32[8,4], index: 0, kind: input, shape index: {}]   ;;  %s380_s1 = inlined_call_operand.vmem [shape: f32[1,128], index: 1, kind: input, shape index: {}]   ;;  %s381_s2 = inlined_call_operand.vmem [shape: f32[1,128], index: 2, kind: input, shape index: {}]   ;;  %s382_s3 = inlined_call_operand.hbm [shape: f32[8,128], index: 3, kind: output, shape index: {}]  }
   0x1   :  { %v15_v0 = vld [vmem:[%s379_s0] sm:$0xff]  ;;  %234 = vset.pattern.permute.xlu0 %v267_v1  ;;  %236 = vset.pattern.permute.xlu1 %v268_v2 }
   0x2   :  { %8 = vsyncpa [#allocation3], 0  ;;  %18 = vperm.xlu0 %234, %v15_v0   ;;  %26 = vperm.xlu1 %236, %v15_v0   ;;  %v269_v3 = vmov 1   ;;  %v270_v4 = vmov 3   ;;  %vm33_vm0 = vcmask 261120   ;;  %vm35_vm1 = vcmask 523264  }
   0x3   :  { %vm37_vm2 = vcmask 785408   ;;  %v239_v8 = vld [vmem:[%s380_s1] ss:$0 sm:$0xff]  ;;  %v271_v27 = vmov 683565275   ;;  %s277_s1 = smov [#allocation2]  }
   0x4   :  { %v240_v11 = vld [vmem:[%s381_s2] ss:$0 sm:$0xff]  ;;  %v272_v29 = vmov 2475754826   ;;  %v273_v32 = vmov 2131351028  }
   0x5   :  { %v274_v35 = vmov 2102212464   ;;  %v275_v38 = vmov 920167782   ;;  %v276_v41 = vmov 1326507024  }
   0x6   :  { %s209_s2 = sshll.u32 %s277_s1, 4  ;;  %s211_s19 = sshll.u32 %s382_s3, 4  ;;  %s210_s2 = int_to_ptr.vmem [resolvable:$true] %s209_s2  ;;  %s212_s19 = int_to_ptr.hbm [resolvable:$true] %s211_s19 }
   0xa   :  { %235 = vset.pattern.permute.xlu0 %v269_v3  ;;  %237 = vset.pattern.permute.xlu1 %v270_v4 }
   0xb   :  { %22 = vperm.xlu0 %235, %v15_v0   ;;  %30 = vperm.xlu1 %237, %v15_v0  }
  0x13   :  { %238 = vset.pattern.permute.xlu0 %v270_v4 }
  0x74   :  { %v19_v5 = vpop.permute.xlu0 %18  ;;  %v27_v6 = vpop.permute.xlu1 %26 }
  0x7d   :  { %v23_v7 = vpop.permute.xlu0 %22  ;;  %v31_v9 = vpop.permute.xlu1 %30 }
  0x7e   :  { %v34_v10 = vsel %vm33_vm0, %v19_v5, %v23_v7 }
  0x7f   :  { %v36_v12 = vsel %vm35_vm1, %v34_v10, %v27_v6 }
  0x80   :  { %v38_v13 = vsel %vm37_vm2, %v36_v12, %v31_v9 }
  0x81   :  { %v43_v14 = vmul.f32 %v239_v8, %v38_v13 }
  0x83   :  { %v308_v15 = vadd.f32 %v240_v11, %v43_v14 }
  0x85   :  { %v52_v16 = vand.u32 2139095040, %v308_v15  ;;  %v49_v19 = vand.u32 2147483647, %v308_v15  ;;  %vm51_vm15 = vcmp.lt.s32.totalorder %v308_v15, 0 }
  0x87   :  { %v53_v17 = vshrl.u32 %v52_v16, 23  ;;  %v56_v22 = vand.u32 8388607, %v49_v19  ;;  %vm366_vm0 = vcmp.le.f32.partialorder %v49_v19, 0.7853982 }
  0x89   :  { %v220_v18 = vadd.s32 4294967169, %v53_v17  ;;  %v57_v26 = vor.u32 8388608, %v56_v22 }
  0x8b   :  { %v59_v20 = vadd.s32 1, %v220_v18  ;;  %v325_v48 = vshll.u32 %v57_v26, 8 }
  0x8d   :  { %vm60_vm3 = vcmp.gt.s32.totalorder %v59_v20, 0  ;;  %v98_v57 = vand.u32 65535, %v325_v48  ;;  %v99_v58 = vshrl.u32 %v325_v48, 16 }
  0x8e   :  { %v61_v21 = vsel %vm60_vm3, %v59_v20, 0 }
  0x8f   :  { %v63_v23 = vand.u32 31, %v61_v21  ;;  %v316_v25 = vshrl.u32 %v61_v21, 5 }
  0x91   :  { %v314_v24 = vsub.s32 32, %v63_v23  ;;  %v66_v28 = vshll.u32 %v271_v27, %v63_v23  ;;  %v69_v30 = vshll.u32 %v272_v29, %v63_v23  ;;  %v72_v34 = vshll.u32 %v273_v32, %v63_v23 }
  0x92   :  { %v75_v37 = vshll.u32 %v274_v35, %v63_v23  ;;  %v78_v40 = vshll.u32 %v275_v38, %v63_v23  ;;  %vm81_vm4 = vcmp.lt.s32.totalorder %v316_v25, 1  ;;  %vm84_vm5 = vcmp.lt.s32.totalorder %v316_v25, 4 }
  0x93   :  { %v67_v31 = vshrl.u32 %v272_v29, %v314_v24  ;;  %v70_v33 = vshrl.u32 %v273_v32, %v314_v24  ;;  %v73_v36 = vshrl.u32 %v274_v35, %v314_v24  ;;  %v76_v39 = vshrl.u32 %v275_v38, %v314_v24 }
  0x94   :  { %v79_v42 = vshrl.u32 %v276_v41, %v314_v24  ;;  %vm83_vm6 = vcmp.lt.s32.totalorder %v316_v25, 3  ;;  %vm82_vm7 = vcmp.lt.s32.totalorder %v316_v25, 2  ;;  %v65_v22 = vshrl.u32 %v271_v27, %v314_v24 }
  0x95   :  { %v68_v43 = vor.u32 %v67_v31, %v66_v28  ;;  %v71_v44 = vor.u32 %v70_v33, %v69_v30  ;;  %v74_v45 = vor.u32 %v73_v36, %v72_v34  ;;  %v77_v46 = vor.u32 %v76_v39, %v75_v37 }
  0x96   :  { %v80_v47 = vor.u32 %v79_v42, %v78_v40 }
  0x97   :  { %v89_v49 = vsel %vm81_vm4, %v68_v43, %v71_v44  ;;  %v93_v50 = vsel %vm81_vm4, %v71_v44, %v74_v45  ;;  %v90_v51 = vsel %vm84_vm5, %v77_v46, 920167782  ;;  %v86_v18 = vsel %vm84_vm5, %v74_v45, 2102212464 }
  0x98   :  { %v94_v52 = vsel %vm84_vm5, %v80_v47, 1326507024  ;;  %v91_v53 = vsel %vm83_vm6, %v74_v45, %v90_v51  ;;  %v85_v31 = vsel %vm81_vm4, %v65_v22, %v68_v43  ;;  %v87_v32 = vsel %vm83_vm6, %v71_v44, %v86_v18 }
  0x99   :  { %v95_v54 = vsel %vm83_vm6, %v77_v46, %v94_v52  ;;  %v92_v55 = vsel %vm82_vm7, %v89_v49, %v91_v53  ;;  %v88_v24 = vsel %vm82_vm7, %v85_v31, %v87_v32  ;;  %vm192_vm4 = vweird.f32 %v308_v15 }
  0x9a   :  { %v96_v56 = vsel %vm82_vm7, %v93_v50, %v95_v54  ;;  %v122_v61 = vand.u32 65535, %v92_v55  ;;  %v123_v62 = vshrl.u32 %v92_v55, 16  ;;  %v142_v39 = vmul.u32 %v325_v48, %v88_v24 }
  0x9b   :  { %v100_v59 = vand.u32 65535, %v96_v56  ;;  %v101_v60 = vshrl.u32 %v96_v56, 16 }
  0x9c   :  { %v125_v2 = vmul.u32 %v123_v62, %v98_v57  ;;  %v126_v3 = vmul.u32 %v122_v61, %v99_v58  ;;  %v124_v7 = vmul.u32 %v122_v61, %v98_v57  ;;  %v127_v11 = vmul.u32 %v123_v62, %v99_v58 }
  0x9d   :  { %v103_v63 = vmul.u32 %v101_v60, %v98_v57  ;;  %v104_v0 = vmul.u32 %v100_v59, %v99_v58  ;;  %v102_v4 = vmul.u32 %v100_v59, %v98_v57  ;;  %v105_v6 = vmul.u32 %v101_v60, %v99_v58 }
  0x9e   :  { %v128_v8 = vshll.u32 %v125_v2, 16  ;;  %v130_v13 = vshll.u32 %v126_v3, 16  ;;  %v129_v29 = vshrl.u32 %v125_v2, 16  ;;  %v131_v35 = vshrl.u32 %v126_v3, 16 }
  0x9f   :  { %v106_v5 = vshll.u32 %v103_v63, 16  ;;  %v108_v9 = vshll.u32 %v104_v0, 16  ;;  %v107_v23 = vshrl.u32 %v103_v63, 16  ;;  %v109_v33 = vshrl.u32 %v104_v0, 16 }
  0xa0   :  { %vm132_vm9 = vc.u32 %v124_v7, %v128_v8  ;;  %v134_v14 = vadd.s32 %v128_v8, %v124_v7 }
  0xa1   :  { %vm110_vm8 = vc.u32 %v102_v4, %v106_v5  ;;  %v112_v10 = vadd.s32 %v106_v5, %v102_v4  ;;  %v133_v17 = vsel %vm132_vm9, 1, %v267_v1 }
  0xa2   :  { %v111_v12 = vsel %vm110_vm8, 1, %v267_v1  ;;  %v135_v21 = vadd.s32 %v133_v17, %v127_v11  ;;  %vm136_vm11 = vc.u32 %v134_v14, %v130_v13  ;;  %v138_v38 = vadd.s32 %v134_v14, %v130_v13 }
  0xa3   :  { %v113_v16 = vadd.s32 %v111_v12, %v105_v6  ;;  %vm114_vm10 = vc.u32 %v112_v10, %v108_v9  ;;  %v137_v28 = vsel %vm136_vm11, 1, %v267_v1 }
  0xa4   :  { %v115_v20 = vsel %vm114_vm10, 1, %v267_v1  ;;  %v139_v30 = vadd.s32 %v137_v28, %v135_v21 }
  0xa5   :  { %v117_v26 = vadd.s32 %v115_v20, %v113_v16 }
  0xa6   :  { %v140_v36 = vadd.s32 %v139_v30, %v129_v29 }
  0xa7   :  { %v118_v34 = vadd.s32 %v117_v26, %v107_v23 }
  0xa8   :  { %v141_v27 = vadd.s32 %v140_v36, %v131_v35 }
  0xa9   :  { %v119_v37 = vadd.s32 %v118_v34, %v109_v33 }
  0xaa   :  { %v145_v1 = vadd.s32 1, %v141_v27 }
  0xab   :  { %vm144_vm12 = vc.u32 %v119_v37, %v138_v38  ;;  %v143_v25 = vadd.s32 %v138_v38, %v119_v37 }
  0xac   :  { %v146_v40 = vsel %vm144_vm12, %v145_v1, %v141_v27 }
  0xad   :  { %v147_v41 = vadd.s32 %v146_v40, %v142_v39 }
  0xaf   :  { %v148_v42 = vadd.s32 536870912, %v147_v41 }
  0xb1   :  { %v149_v43 = vshrl.u32 %v148_v42, 30 }
  0xb3   :  { %v150_v45 = vshll.u32 %v149_v43, 30  ;;  %v173_v6 = vsub.s32 4, %v149_v43 }
  0xb5   :  { %v151_v44 = vsub.s32 %v147_v41, %v150_v45  ;;  %v174_v11 = vsel %vm51_vm15, %v173_v6, %v149_v43 }
  0xb6   :  { %v176_v19 = vsel %vm366_vm0, 0, %v174_v11 }
  0xb7   :  { %vm152_vm13 = vcmp.lt.s32.totalorder %v151_v44, 0  ;;  %v153_v46 = vsub.s32 0, %v151_v44  ;;  %v193_v20 = vand.u32 3, %v176_v19 }
  0xb9   :  { %v154_v47 = vsel %vm152_vm13, %v153_v46, %v151_v44  ;;  %vm195_vm1 = vcmp.eq.s32.totalorder %v193_v20, 0  ;;  %vm198_vm2 = vcmp.eq.s32.totalorder %v193_v20, 2  ;;  %vm194_vm3 = vcmp.lt.s32.totalorder %v193_v20, 2 }
  0xba   :  { %v155_v49 = vclz %v154_v47 }
  0xbc   :  { %v221_v50 = vadd.s32 4294967294, %v155_v49 }
  0xbe   :  { %vm222_vm14 = vcmp.lt.s32.totalorder %v221_v50, 0 }
  0xbf   :  { %v158_v51 = vsel %vm222_vm14, 0, %v221_v50 }
  0xc0   :  { %v159_v52 = vsub.s32 32, %v158_v51  ;;  %v163_v53 = vsub.s32 4294967266, %v158_v51  ;;  %v160_v54 = vshll.u32 %v151_v44, %v158_v51 }
  0xc2   :  { %v161_v55 = vshrl.u32 %v143_v25, %v159_v52  ;;  %v164_v56 = vadd.s32 127, %v163_v53 }
  0xc4   :  { %v162_v48 = vor.u32 %v161_v55, %v160_v54  ;;  %v165_v57 = vshll.u32 %v164_v56, 23 }
  0xc6   :  { %v166_v58 = vor.u32 4788187, %v165_v57  ;;  %v169_v60 = vcvt.s32.f32 %v162_v48 }
  0xc8   :  { %v167_v59 = vand.u32 2147483647, %v166_v58 }
  0xca   :  { %v170_v61 = vmul.f32 %v169_v60, %v167_v59 }
  0xcc   :  { %v171_v62 = vxor.u32 2147483648, %v170_v61 }
  0xce   :  { %v172_v0 = vsel %vm51_vm15, %v171_v62, %v170_v61 }
  0xcf   :  { %v175_v2 = vsel %vm366_vm0, %v308_v15, %v172_v0 }
  0xd0   :  { %v177_v3 = vmul.f32 %v175_v2, %v175_v2 }
  0xd2   :  { %v178_v4 = vmul.f32 -0.001358992, %v177_v3  ;;  %v185_v5 = vmul.f32 -0.00019511016, %v177_v3 }
  0xd4   :  { %v179_v7 = vadd.f32 0.041655596, %v178_v4  ;;  %v186_v8 = vadd.f32 0.008332121, %v185_v5 }
  0xd6   :  { %v180_v9 = vmul.f32 %v179_v7, %v177_v3  ;;  %v187_v10 = vmul.f32 %v186_v8, %v177_v3 }
  0xd8   :  { %v181_v12 = vadd.f32 -0.4999988, %v180_v9  ;;  %v188_v13 = vadd.f32 -0.16666654, %v187_v10 }
  0xda   :  { %v182_v14 = vmul.f32 %v181_v12, %v177_v3  ;;  %v189_v16 = vmul.f32 %v188_v13, %v177_v3 }
  0xdc   :  { %v183_v17 = vadd.f32 1.0, %v182_v14  ;;  %v190_v18 = vadd.f32 1.0, %v189_v16 }
  0xde   :  { %v191_v21 = vmul.f32 %v190_v18, %v175_v2  ;;  %v199_v22 = vxor.u32 2147483648, %v183_v17 }
  0xe0   :  { %v196_v23 = vxor.u32 2147483648, %v191_v21  ;;  %v200_v28 = vsel %vm198_vm2, %v199_v22, %v191_v21 }
  0xe2   :  { %v197_v26 = vsel %vm195_vm1, %v183_v17, %v196_v23 }
  0xe3   :  { %v201_v29 = vsel %vm194_vm3, %v197_v26, %v200_v28 }
  0xe4   :  { %v202_v30 = vsel %vm192_vm4, nan, %v201_v29 }
  0xe5   :  { %203 = vst [vmem:[#allocation2] sm:$0xff] %v202_v30 }
  0xe6   :  { %214 = dma.vmem_to_hbm [thread:$0]  %s210_s2, 128, %s212_s19, [#allocation3]  }
  0xe7   :  { %265 = dma.done.wait [#allocation3], 128  }
  0xe8   :  { %266 = vsyncadd [#allocation3], 4294967168 }
  0xe9   :  { %219 = vsyncpa [#allocation3], 1 }

</bundles_post_ra>
